<compile_context>
chip_gen: v6e
topology: v6e:2x2x1
jax: 0.10.0
libtpu: 0.0.40
codegen_flags: <defaults>
</compile_context>

<pallas_src>
import jax
import jax.numpy as jnp
from jax.experimental import pallas as pl
from jax.experimental.pallas import tpu as pltpu


def _mlp_kernel(x_ref, w1_ref, b1_ref, w2_ref, b2_ref, w3_ref, b3_ref, o_ref):
    # Whole forward for one (TB, D) tile of rows: 3 matmuls + biases + 2 ReLUs.
    x = x_ref[...]                                                          # (TB, D)
    h1 = jnp.dot(x, w1_ref[...], preferred_element_type=jnp.float32) + b1_ref[...]
    h1 = jnp.maximum(h1, 0.0)                                               # (TB, 16)
    h2 = jnp.dot(h1, w2_ref[...], preferred_element_type=jnp.float32) + b2_ref[...]
    h2 = jnp.maximum(h2, 0.0)                                               # (TB, 8)
    o_ref[...] = (jnp.dot(h2, w3_ref[...], preferred_element_type=jnp.float32)
                  + b3_ref[...])                                            # (TB, 1)


def _round_up(n, m):
    return ((n + m - 1) // m) * m


def my_model_forward(x, params, *, block_b=2048):
    """x: (B, input_dim) float32 -> (B,) float32 (matches PyTorch squeeze(1))."""
    w1, b1, w2, b2, w3, b3 = params
    B, D = x.shape

    # Batch tile: multiple of 8 sublanes, never larger than (padded) B.
    tb = min(block_b, _round_up(B, 8))
    tb = _round_up(tb, 8)
    Bp = _round_up(B, tb)
    if Bp != B:
        x = jnp.pad(x, ((0, Bp - B), (0, 0)))   # extra rows computed then dropped
    grid = (Bp // tb,)

    # Weights/biases: one full block, same block index every grid step -> stay
    # resident in VMEM (not re-DMA'd per tile).
    def const(a):
        return pl.BlockSpec(a.shape, lambda i: (0,) * a.ndim)

    weight_bytes = sum(int(a.size) * a.dtype.itemsize
                       for a in (w1, b1, w2, b2, w3, b3))
    cost = pl.CostEstimate(
        flops=2 * Bp * (D * 16 + 16 * 8 + 8 * 1),
        transcendentals=0,
        bytes_accessed=Bp * D * 4 + Bp * 4 + weight_bytes,
    )

    out = pl.pallas_call(
        _mlp_kernel,
        out_shape=jax.ShapeDtypeStruct((Bp, 1), jnp.float32),
        grid=grid,
        in_specs=[
            pl.BlockSpec((tb, D), lambda i: (i, 0)),   # x: tiled over batch
            const(w1), const(b1),
            const(w2), const(b2),
            const(w3), const(b3),
        ],
        out_specs=pl.BlockSpec((tb, 1), lambda i: (i, 0)),
        compiler_params=pltpu.CompilerParams(
            dimension_semantics=("parallel",),          # megacore on v7x
            vmem_limit_bytes=32 * 1024 * 1024,
        ),
        cost_estimate=cost,
    )(x, w1, b1, w2, b2, w3, b3)

    return out[:B, 0]  # drop padded rows, squeeze(1)


def init_params(key, input_dim):
    """Deterministic synthetic init (shapes match the nn.Linear layers)."""
    ks = jax.random.split(key, 6)

    def lin(kw, kb, fan_in, fan_out):
        bound = 1.0 / jnp.sqrt(fan_in)
        w = jax.random.uniform(kw, (fan_in, fan_out), jnp.float32, -bound, bound)
        b = jax.random.uniform(kb, (1, fan_out), jnp.float32, -bound, bound)
        return w, b

    w1, b1 = lin(ks[0], ks[1], input_dim, 16)
    w2, b2 = lin(ks[2], ks[3], 16, 8)
    w3, b3 = lin(ks[4], ks[5], 8, 1)
    return (w1, b1, w2, b2, w3, b3)


def reference_forward(x, params):
    w1, b1, w2, b2, w3, b3 = params
    h = jnp.maximum(x @ w1 + b1, 0.0)
    h = jnp.maximum(h @ w2 + b2, 0.0)
    return (h @ w3 + b3)[:, 0]


if __name__ == "__main__":
    key = jax.random.PRNGKey(0)
    k_x, k_p, k_x2 = jax.random.split(key, 3)

    # Small case matching the module spec (B=8 rows, 32 features).
    B, input_dim = 8, 32
    x = jax.random.normal(k_x, (B, input_dim), jnp.float32)
    params = init_params(k_p, input_dim)

    y = jax.block_until_ready(my_model_forward(x, params))
    y_ref = reference_forward(x, params)
    assert y.shape == (B,)
    assert jnp.allclose(y, y_ref, atol=1e-5, rtol=1e-5)

    # Second case: exercises the multi-tile grid + ragged-batch padding path.
    B2 = 300
    x2 = jax.random.normal(k_x2, (B2, input_dim), jnp.float32)
    y2 = jax.block_until_ready(my_model_forward(x2, params, block_b=128))
    y2_ref = reference_forward(x2, params)
    assert y2.shape == (B2,)
    assert jnp.allclose(y2, y2_ref, atol=1e-5, rtol=1e-5)

    print("KERNEL_OK")
</pallas_src>

<mosaic_0001>
module attributes {stable_mosaic.version = 11 : i64} {
  func.func @_mlp_kernel(%arg0: i32, %arg1: memref<8x32xf32, #tpu.memory_space<vmem>>, %arg2: memref<32x16xf32, #tpu.memory_space<vmem>>, %arg3: memref<1x16xf32, #tpu.memory_space<vmem>>, %arg4: memref<16x8xf32, #tpu.memory_space<vmem>>, %arg5: memref<1x8xf32, #tpu.memory_space<vmem>>, %arg6: memref<8x1xf32, #tpu.memory_space<vmem>>, %arg7: memref<1x1xf32, #tpu.memory_space<vmem>>, %arg8: memref<8x1xf32, #tpu.memory_space<vmem>>) attributes {dimension_semantics = [#tpu.dimension_semantics<parallel>], iteration_bounds = array<i64: 1>, scalar_prefetch = 0 : i64, scratch_operands = 0 : i64, tpu.core_type = #tpu.core_type<tc>, window_params = [{transform_indices = @transform_0, window_bounds = array<i64: 8, 32>}, {pipeline_mode = #tpu.pipeline_mode<synchronous>, transform_indices = @transform_1, window_bounds = array<i64: 32, 16>}, {pipeline_mode = #tpu.pipeline_mode<synchronous>, transform_indices = @transform_2, window_bounds = array<i64: 1, 16>}, {pipeline_mode = #tpu.pipeline_mode<synchronous>, transform_indices = @transform_3, window_bounds = array<i64: 16, 8>}, {pipeline_mode = #tpu.pipeline_mode<synchronous>, transform_indices = @transform_4, window_bounds = array<i64: 1, 8>}, {pipeline_mode = #tpu.pipeline_mode<synchronous>, transform_indices = @transform_5, window_bounds = array<i64: 8, 1>}, {pipeline_mode = #tpu.pipeline_mode<synchronous>, transform_indices = @transform_6, window_bounds = array<i64: 1, 1>}, {transform_indices = @transform_7, window_bounds = array<i64: 8, 1>}]} {
    %c0 = arith.constant 0 : index
    %c0_0 = arith.constant 0 : index
    %0 = vector.load %arg1[%c0, %c0_0] : memref<8x32xf32, #tpu.memory_space<vmem>>, vector<8x32xf32>
    %c0_1 = arith.constant 0 : index
    %c0_2 = arith.constant 0 : index
    %1 = vector.load %arg2[%c0_1, %c0_2] : memref<32x16xf32, #tpu.memory_space<vmem>>, vector<32x16xf32>
    %cst = arith.constant dense<0.000000e+00> : vector<8x16xf32>
    %2 = tpu.matmul %0, %1, %cst {dimension_numbers = #tpu.dot_dimension_numbers<[1], [0], [0], [1], [0, 0, 1, 1], [], []>} : vector<8x32xf32>, vector<32x16xf32>, vector<8x16xf32> -> vector<8x16xf32>
    %c0_3 = arith.constant 0 : index
    %c0_4 = arith.constant 0 : index
    %3 = vector.load %arg3[%c0_3, %c0_4] : memref<1x16xf32, #tpu.memory_space<vmem>>, vector<1x16xf32>
    %4 = vector.broadcast %3 : vector<1x16xf32> to vector<8x16xf32>
    %5 = arith.addf %2, %4 : vector<8x16xf32>
    %cst_5 = arith.constant 0.000000e+00 : f32
    %6 = vector.broadcast %cst_5 : f32 to vector<8x16xf32>
    %7 = arith.maximumf %5, %6 : vector<8x16xf32>
    %c0_6 = arith.constant 0 : index
    %c0_7 = arith.constant 0 : index
    %8 = vector.load %arg4[%c0_6, %c0_7] : memref<16x8xf32, #tpu.memory_space<vmem>>, vector<16x8xf32>
    %cst_8 = arith.constant dense<0.000000e+00> : vector<8x8xf32>
    %9 = tpu.matmul %7, %8, %cst_8 {dimension_numbers = #tpu.dot_dimension_numbers<[1], [0], [0], [1], [0, 0, 1, 1], [], []>} : vector<8x16xf32>, vector<16x8xf32>, vector<8x8xf32> -> vector<8x8xf32>
    %c0_9 = arith.constant 0 : index
    %c0_10 = arith.constant 0 : index
    %10 = vector.load %arg5[%c0_9, %c0_10] : memref<1x8xf32, #tpu.memory_space<vmem>>, vector<1x8xf32>
    %11 = vector.broadcast %10 : vector<1x8xf32> to vector<8x8xf32>
    %12 = arith.addf %9, %11 : vector<8x8xf32>
    %cst_11 = arith.constant 0.000000e+00 : f32
    %13 = vector.broadcast %cst_11 : f32 to vector<8x8xf32>
    %14 = arith.maximumf %12, %13 : vector<8x8xf32>
    %c0_12 = arith.constant 0 : index
    %c0_13 = arith.constant 0 : index
    %15 = vector.load %arg6[%c0_12, %c0_13] : memref<8x1xf32, #tpu.memory_space<vmem>>, vector<8x1xf32>
    %cst_14 = arith.constant dense<0.000000e+00> : vector<8x1xf32>
    %16 = tpu.matmul %14, %15, %cst_14 {dimension_numbers = #tpu.dot_dimension_numbers<[1], [0], [0], [1], [0, 0, 1, 1], [], []>} : vector<8x8xf32>, vector<8x1xf32>, vector<8x1xf32> -> vector<8x1xf32>
    %c0_15 = arith.constant 0 : index
    %c0_16 = arith.constant 0 : index
    %17 = vector.load %arg7[%c0_15, %c0_16] : memref<1x1xf32, #tpu.memory_space<vmem>>, vector<1x1xf32>
    %18 = vector.broadcast %17 : vector<1x1xf32> to vector<8x1xf32>
    %19 = arith.addf %16, %18 : vector<8x1xf32>
    %c0_17 = arith.constant 0 : index
    %c0_18 = arith.constant 0 : index
    %20 = vector.load %arg8[%c0_17, %c0_18] : memref<8x1xf32, #tpu.memory_space<vmem>>, vector<8x1xf32>
    tpu.vector_store %arg8[%c0_17, %c0_18], %19 {strides = array<i32>} : memref<8x1xf32, #tpu.memory_space<vmem>>, vector<8x1xf32>,
    return
  }
  func.func @transform_0(%arg0: i32) -> (i32, i32) {
    %c0_i32 = arith.constant 0 : i32
    %c0_i32_0 = arith.constant 0 : i32
    return %arg0, %c0_i32 : i32, i32
  }
  func.func @transform_1(%arg0: i32) -> (i32, i32) {
    %c0_i32 = arith.constant 0 : i32
    %c0_i32_0 = arith.constant 0 : i32
    %c0_i32_1 = arith.constant 0 : i32
    return %c0_i32, %c0_i32_0 : i32, i32
  }
  func.func @transform_2(%arg0: i32) -> (i32, i32) {
    %c0_i32 = arith.constant 0 : i32
    %c0_i32_0 = arith.constant 0 : i32
    %c0_i32_1 = arith.constant 0 : i32
    return %c0_i32, %c0_i32_0 : i32, i32
  }
  func.func @transform_3(%arg0: i32) -> (i32, i32) {
    %c0_i32 = arith.constant 0 : i32
    %c0_i32_0 = arith.constant 0 : i32
    %c0_i32_1 = arith.constant 0 : i32
    return %c0_i32, %c0_i32_0 : i32, i32
  }
  func.func @transform_4(%arg0: i32) -> (i32, i32) {
    %c0_i32 = arith.constant 0 : i32
    %c0_i32_0 = arith.constant 0 : i32
    %c0_i32_1 = arith.constant 0 : i32
    return %c0_i32, %c0_i32_0 : i32, i32
  }
  func.func @transform_5(%arg0: i32) -> (i32, i32) {
    %c0_i32 = arith.constant 0 : i32
    %c0_i32_0 = arith.constant 0 : i32
    %c0_i32_1 = arith.constant 0 : i32
    return %c0_i32, %c0_i32_0 : i32, i32
  }
  func.func @transform_6(%arg0: i32) -> (i32, i32) {
    %c0_i32 = arith.constant 0 : i32
    %c0_i32_0 = arith.constant 0 : i32
    %c0_i32_1 = arith.constant 0 : i32
    return %c0_i32, %c0_i32_0 : i32, i32
  }
  func.func @transform_7(%arg0: i32) -> (i32, i32) {
    %c0_i32 = arith.constant 0 : i32
    %c0_i32_0 = arith.constant 0 : i32
    return %arg0, %c0_i32 : i32, i32
  }
}

</mosaic_0001>

<bundles_post_ra>
// kernel: tpu_custom_call.1
= control target key start
LH: loop header
LB: loop body
LE: loop exit
PB: predicated region body
PF: predicated region fallthrough
CT: control target
= control target key end

     0   :  { %v328_v0 = vmov 0.0   ;;  %vm329_vm0 = vmmov 0   ;;  %vm40_vm1 = vcmask 261120   ;;  %vm124_vm2 = vcmask 130048   ;;  %s409_s1 = inlined_call_operand.vmem [shape: f32[32,16], index: 1, kind: input, shape index: {}]   ;;  %s410_s0 = inlined_call_operand.vmem [shape: f32[8,32], index: 0, kind: input, shape index: {}]   ;;  %s411_s3 = inlined_call_operand.vmem [shape: f32[16,8], index: 3, kind: input, shape index: {}]   ;;  %s412_s2 = inlined_call_operand.vmem [shape: f32[1,16], index: 2, kind: input, shape index: {}]   ;;  %s413_s5 = inlined_call_operand.vmem [shape: f32[8,1], index: 5, kind: input, shape index: {}]   ;;  %s414_s6 = inlined_call_operand.<no memory space> [shape: f32[1,1], index: 6, kind: input, shape index: {}]   ;;  %s415_s4 = inlined_call_operand.vmem [shape: f32[1,8], index: 4, kind: input, shape index: {}]   ;;  %s416_s7 = inlined_call_operand.vmem [shape: f32[8,1], index: 7, kind: output, shape index: {}]  }
   0x1   :  { %303 = vmatprep.subr.mxu0 %v328_v0  ;;  %v32_v1 = vld [vmem:[%s409_s1 + $0x18] sm:$0xff]  ;;  %v31_v2 = vld [vmem:[%s409_s1 + $0x10] sm:$0xff]  ;;  %311 = vmatprep.mubr.msk.f32.mxu0 %vm329_vm0, %v328_v0  ;;  %v30_v3 = vld [vmem:[%s409_s1 + $0x8] sm:$0xff]  ;;  %v12_v14 = vstv %s414_s6  ;;  %vm207_vm3 = vcmask 64512   ;;  %vm281_vm4 = vcmask 7168  }
   0x2   :  { %304 = vmatpush3.msra.mxu0 %v32_v1  ;;  %314 = vmatprep.subr.mxu1 %v328_v0  ;;  %v29_v4 = vld [vmem:[%s409_s1] sm:$0xff]  ;;  %v116_v6 = vld [vmem:[%s411_s3 + $0x8] sm:$0xff]  ;;  %13 = vst [vmem:[#allocation2] sm:$0x1] %v12_v14 }
   0x3   :  { %305 = vmatprep.subr.mxu0 %v328_v0  ;;  %318 = vmatprep.mubr.msk.f32.mxu1 %vm329_vm0, %v328_v0  ;;  %v28_v5 = vld [vmem:[%s410_s0] sm:$0xff] }
   0x4   :  { %306 = vmatpush3.msra.mxu0 %v31_v2  ;;  %315 = vmatpush3.msra.mxu1 %v116_v6  ;;  %v115_v7 = vld [vmem:[%s411_s3] sm:$0xff] }
   0x5   :  { %307 = vmatprep.subr.mxu0 %v328_v0  ;;  %316 = vmatprep.subr.mxu1 %v328_v0  ;;  %v287_v8 = vld [vmem:[%s412_s2] ss:$0 sm:$0xff] }
   0x6   :  { %308 = vmatpush3.msra.mxu0 %v30_v3  ;;  %317 = vmatpush3.msra.mxu1 %v115_v7  ;;  %v199_v13 = vld [vmem:[%s413_s5] sm:$0xff] }
   0x7   :  { %309 = vmatprep.subr.mxu0 %v328_v0  ;;  %321 = vmatprep.subr.mxu1 %v328_v0  ;;  %v289_v15 = vld [vmem:[%s415_s4] ss:$0 sm:$0xff] }
   0x8   :  { %310 = vmatpush3.msra.mxu0 %v29_v4 }
   0x9   :  { %312 = vmatmul.mubr.msk.f32.vlgmr.msra.gmra.mxu0 %vm40_vm1, %v28_v5  ;;  %v291_v20 = vld [vmem:[#allocation2] ss:$0 sm:$0xff] }
  0xc9   :  { %v110_v9 = vpop.f32.mrf.mxu0 }
  0xca   :  { %v111_v10 = vadd.f32 %v287_v8, %v110_v9 }
  0xcb   :  { %v313_v11 = vpop.f32.mrf.mxu0 }
  0xcc   :  { %v114_v12 = vmax.f32 %v111_v10, 0.0 }
  0xce   :  { %319 = vmatmul.mubr.msk.f32.vlgmr.msra.gmra.mxu1 %vm124_vm2, %v114_v12 }
  0xcf   :  { %323 = vmatprep.mubr.msk.f32.mxu1 %vm329_vm0, %v328_v0  ;;  %322 = vmatpush3.msra.mxu1 %v199_v13 }
 0x18e   :  { %v194_v16 = vpop.f32.mrf.mxu1 }
 0x18f   :  { %v195_v17 = vadd.f32 %v289_v15, %v194_v16 }
 0x190   :  { %v320_v18 = vpop.f32.mrf.mxu1 }
 0x191   :  { %v198_v19 = vmax.f32 %v195_v17, 0.0 }
 0x193   :  { %324 = vmatmul.mubr.msk.f32.vlgmr.msra.gmra.mxu1 %vm207_vm3, %v198_v19 }
 0x253   :  { %v277_v21 = vpop.f32.mrf.mxu1 }
 0x254   :  { %v278_v22 = vadd.f32 %v291_v20, %v277_v21 }
 0x255   :  { %v325_v23 = vpop.f32.mrf.mxu1 }
 0x256   :  { %282 = vst.msk [vmem:[%s416_s7] sm:$0xff] %vm281_vm4, %v278_v22 }

</bundles_post_ra>
